<compile_context>
chip_gen: v7x
topology: tpu7x:2x2x1
jax: 0.10.0
libtpu: 0.0.40
codegen_flags: <defaults>
</compile_context>

<pallas_src>
import functools

import jax
import jax.numpy as jnp
import numpy as np
from jax.experimental import pallas as pl
from jax.experimental.pallas import tpu as pltpu

LN_EPS = 1e-5  # PyTorch nn.LayerNorm default


def _round_up(n, m):
    return ((n + m - 1) // m) * m


def _info_node_kernel(x_ref, g_ref, be_ref, w1_ref, b1_ref, w2_ref, b2_ref,
                      o_ref, *, s, b, inv_n):
    """Single invocation: LayerNorm + MLP on all S*B rows, then reduce over S.

    x_ref : (S*Bp, D_in)  f32   stacked states (s=0 local, s>=1 neighbors)
    o_ref : (Bp, Dp_out)  f32   local + mean(neighbors)
    """
    x = x_ref[...]                                             # (S*Bp, D_in)

    # LayerNorm over the feature axis (kept in f32 on the VPU).
    mean = jnp.mean(x, axis=-1, keepdims=True)
    cen = x - mean
    var = jnp.mean(cen * cen, axis=-1, keepdims=True)
    xn = cen * jax.lax.rsqrt(var + LN_EPS)
    xn = xn * g_ref[...] + be_ref[...]                         # (S*Bp, D_in)

    # Linear -> (Dropout = identity at eval) -> ReLU -> Linear on the MXU.
    # Activations are cast to the weight dtype (bf16 on v6e/v7x path, else f32);
    # accumulation is always f32 via preferred_element_type.
    h = jnp.dot(xn.astype(w1_ref.dtype), w1_ref[...],
                preferred_element_type=jnp.float32) + b1_ref[...]
    h = jnp.maximum(h, 0.0)
    y = jnp.dot(h.astype(w2_ref.dtype), w2_ref[...],
                preferred_element_type=jnp.float32) + b2_ref[...]   # (S*Bp, Dp_out)

    # Reduce over the stacked-state axis with static, sublane-aligned slices:
    #   out = y_local + (1/N) * sum_s y_neighbor_s
    out = y[0:b, :]
    if s > 1:
        acc = y[b:2 * b, :]
        for i in range(2, s):                                  # S is small & static
            acc = acc + y[i * b:(i + 1) * b, :]
        out = out + acc * inv_n
    o_ref[...] = out


@functools.partial(jax.jit, static_argnames=("use_bf16_mxu",))
def information_node_forward_stacked(stacked, params, use_bf16_mxu=False):
    """stacked: (S, B, D_in) f32; s=0 is the local state, s>=1 are neighbors."""
    gamma, beta, w1, b1, w2, b2 = params
    S, B, D_in = stacked.shape
    H = w1.shape[1]
    D_out = w2.shape[1]

    # Lane/sublane-dense padding (zeros => math unchanged; sliced off at the end).
    Bp = _round_up(B, 8)
    Hp = _round_up(H, 128)
    Dp_out = _round_up(D_out, 128)

    xp = jnp.pad(stacked, ((0, 0), (0, Bp - B), (0, 0))).reshape(S * Bp, D_in)
    w1p = jnp.pad(w1, ((0, 0), (0, Hp - H)))
    b1p = jnp.pad(b1, ((0, 0), (0, Hp - H)))
    w2p = jnp.pad(w2, ((0, Hp - H), (0, Dp_out - D_out)))
    b2p = jnp.pad(b2, ((0, 0), (0, Dp_out - D_out)))
    if use_bf16_mxu:                      # v6e/v7x MXU peak path; halves weight DMA
        w1p = w1p.astype(jnp.bfloat16)
        w2p = w2p.astype(jnp.bfloat16)

    num_neighbors = S - 1
    inv_n = 1.0 / num_neighbors if num_neighbors > 0 else 0.0

    kernel = functools.partial(_info_node_kernel, s=S, b=Bp, inv_n=inv_n)
    vmem = pl.BlockSpec(memory_space=pltpu.MemorySpace.VMEM)

    out = pl.pallas_call(
        kernel,
        out_shape=jax.ShapeDtypeStruct((Bp, Dp_out), jnp.float32),
        in_specs=[vmem] * 7,
        out_specs=vmem,
    )(xp, gamma, beta, w1p, b1p, w2p, b2p)
    return out[:B, :D_out]


def information_node_forward(state, neighbor_states, params, use_bf16_mxu=False):
    """Convenience list API. state: (B, D_in); neighbor_states: list of (B, D_in).

    Callers invoking this per-timestep should pre-stack once and call
    information_node_forward_stacked directly to avoid re-materializing the stack.
    """
    states = [state] + (list(neighbor_states) if neighbor_states else [])
    stacked = jnp.stack(states, axis=0)                        # (S, B, D_in)
    return information_node_forward_stacked(stacked, params, use_bf16_mxu=use_bf16_mxu)


def _reference(state, neighbor_states, params):
    gamma, beta, w1, b1, w2, b2 = params

    def proc(x):
        m = jnp.mean(x, axis=-1, keepdims=True)
        v = jnp.mean((x - m) ** 2, axis=-1, keepdims=True)
        xn = (x - m) / jnp.sqrt(v + LN_EPS) * gamma + beta
        h = jnp.maximum(xn @ w1 + b1, 0.0)
        return h @ w2 + b2

    out = proc(state)
    if neighbor_states:
        neigh = jnp.stack([proc(s) for s in neighbor_states], axis=1)
        out = out + jnp.mean(neigh, axis=1)
    return out


def make_params(key, input_dim, hidden_dim, output_dim):
    k1, k2, k3, k4 = jax.random.split(key, 4)
    gamma = jnp.ones((1, input_dim), jnp.float32)              # LayerNorm default init
    beta = jnp.zeros((1, input_dim), jnp.float32)
    w1 = jax.random.normal(k1, (input_dim, hidden_dim), jnp.float32) * 0.1
    b1 = jax.random.normal(k2, (1, hidden_dim), jnp.float32) * 0.01
    w2 = jax.random.normal(k3, (hidden_dim, output_dim), jnp.float32) * 0.1
    b2 = jax.random.normal(k4, (1, output_dim), jnp.float32) * 0.01
    return (gamma, beta, w1, b1, w2, b2)


if __name__ == "__main__":
    B, D_IN, HID, D_OUT = 8, 32, 64, 32
    NUM_NEIGHBORS = 3

    key = jax.random.PRNGKey(0)
    kp, ks, kn = jax.random.split(key, 3)
    params = make_params(kp, D_IN, HID, D_OUT)

    state = jax.random.normal(ks, (B, D_IN), jnp.float32)
    neighbor_states = [
        jax.random.normal(jax.random.fold_in(kn, i), (B, D_IN), jnp.float32)
        for i in range(NUM_NEIGHBORS)
    ]

    # f32 path, with neighbors.
    out = jax.block_until_ready(information_node_forward(state, neighbor_states, params))
    ref = _reference(state, neighbor_states, params)
    np.testing.assert_allclose(np.asarray(out), np.asarray(ref), rtol=1e-5, atol=1e-5)

    # f32 path, no neighbors (S == 1 branch).
    out0 = jax.block_until_ready(information_node_forward(state, [], params))
    ref0 = _reference(state, [], params)
    np.testing.assert_allclose(np.asarray(out0), np.asarray(ref0), rtol=1e-5, atol=1e-5)

    # bf16-MXU path (v6e/v7x default when dims scale); loose tolerance.
    out_bf16 = jax.block_until_ready(
        information_node_forward(state, neighbor_states, params, use_bf16_mxu=True))
    np.testing.assert_allclose(np.asarray(out_bf16), np.asarray(ref), rtol=1e-1, atol=1e-1)

    print("KERNEL_OK")
</pallas_src>

<mosaic_0001>
module attributes {stable_mosaic.version = 11 : i64} {
  func.func @_info_node_kernel(%arg0: memref<32x32xf32, #tpu.memory_space<vmem>>, %arg1: memref<1x32xf32, #tpu.memory_space<vmem>>, %arg2: memref<1x32xf32, #tpu.memory_space<vmem>>, %arg3: memref<32x128xf32, #tpu.memory_space<vmem>>, %arg4: memref<1x128xf32, #tpu.memory_space<vmem>>, %arg5: memref<128x128xf32, #tpu.memory_space<vmem>>, %arg6: memref<1x128xf32, #tpu.memory_space<vmem>>, %arg7: memref<8x128xf32, #tpu.memory_space<vmem>>) attributes {dimension_semantics = [], scalar_prefetch = 0 : i64, scratch_operands = 0 : i64, tpu.core_type = #tpu.core_type<tc>} {
    %c0 = arith.constant 0 : index
    %c0_0 = arith.constant 0 : index
    %0 = vector.load %arg0[%c0, %c0_0] : memref<32x32xf32, #tpu.memory_space<vmem>>, vector<32x32xf32>
    %cst = arith.constant dense<0.000000e+00> : vector<32xf32>
    %1 = vector.multi_reduction <add>, %0, %cst [1] : vector<32x32xf32> to vector<32xf32>
    %2 = vector.shape_cast %1 : vector<32xf32> to vector<32x1xf32>
    %cst_1 = arith.constant 3.200000e+01 : f32
    %3 = vector.broadcast %cst_1 : f32 to vector<32x1xf32>
    %4 = arith.divf %2, %3 : vector<32x1xf32>
    %5 = vector.broadcast %4 : vector<32x1xf32> to vector<32x32xf32>
    %6 = arith.subf %0, %5 : vector<32x32xf32>
    %7 = arith.mulf %6, %6 : vector<32x32xf32>
    %cst_2 = arith.constant dense<0.000000e+00> : vector<32xf32>
    %8 = vector.multi_reduction <add>, %7, %cst_2 [1] : vector<32x32xf32> to vector<32xf32>
    %9 = vector.shape_cast %8 : vector<32xf32> to vector<32x1xf32>
    %cst_3 = arith.constant 3.200000e+01 : f32
    %10 = vector.broadcast %cst_3 : f32 to vector<32x1xf32>
    %11 = arith.divf %9, %10 : vector<32x1xf32>
    %cst_4 = arith.constant 9.99999974E-6 : f32
    %12 = vector.broadcast %cst_4 : f32 to vector<32x1xf32>
    %13 = arith.addf %11, %12 : vector<32x1xf32>
    %14 = math.rsqrt %13 : vector<32x1xf32>
    %15 = vector.broadcast %14 : vector<32x1xf32> to vector<32x32xf32>
    %16 = arith.mulf %6, %15 : vector<32x32xf32>
    %c0_5 = arith.constant 0 : index
    %c0_6 = arith.constant 0 : index
    %17 = vector.load %arg1[%c0_5, %c0_6] : memref<1x32xf32, #tpu.memory_space<vmem>>, vector<1x32xf32>
    %18 = vector.broadcast %17 : vector<1x32xf32> to vector<32x32xf32>
    %19 = arith.mulf %16, %18 : vector<32x32xf32>
    %c0_7 = arith.constant 0 : index
    %c0_8 = arith.constant 0 : index
    %20 = vector.load %arg2[%c0_7, %c0_8] : memref<1x32xf32, #tpu.memory_space<vmem>>, vector<1x32xf32>
    %21 = vector.broadcast %20 : vector<1x32xf32> to vector<32x32xf32>
    %22 = arith.addf %19, %21 : vector<32x32xf32>
    %c0_9 = arith.constant 0 : index
    %c0_10 = arith.constant 0 : index
    %23 = vector.load %arg3[%c0_9, %c0_10] : memref<32x128xf32, #tpu.memory_space<vmem>>, vector<32x128xf32>
    %cst_11 = arith.constant dense<0.000000e+00> : vector<32x128xf32>
    %24 = tpu.matmul %22, %23, %cst_11 {dimension_numbers = #tpu.dot_dimension_numbers<[1], [0], [0], [1], [0, 0, 1, 1], [], []>} : vector<32x32xf32>, vector<32x128xf32>, vector<32x128xf32> -> vector<32x128xf32>
    %c0_12 = arith.constant 0 : index
    %c0_13 = arith.constant 0 : index
    %25 = vector.load %arg4[%c0_12, %c0_13] : memref<1x128xf32, #tpu.memory_space<vmem>>, vector<1x128xf32>
    %26 = vector.broadcast %25 : vector<1x128xf32> to vector<32x128xf32>
    %27 = arith.addf %24, %26 : vector<32x128xf32>
    %cst_14 = arith.constant 0.000000e+00 : f32
    %28 = vector.broadcast %cst_14 : f32 to vector<32x128xf32>
    %29 = arith.maximumf %27, %28 : vector<32x128xf32>
    %c0_15 = arith.constant 0 : index
    %c0_16 = arith.constant 0 : index
    %30 = vector.load %arg5[%c0_15, %c0_16] : memref<128x128xf32, #tpu.memory_space<vmem>>, vector<128x128xf32>
    %cst_17 = arith.constant dense<0.000000e+00> : vector<32x128xf32>
    %31 = tpu.matmul %29, %30, %cst_17 {dimension_numbers = #tpu.dot_dimension_numbers<[1], [0], [0], [1], [0, 0, 1, 1], [], []>} : vector<32x128xf32>, vector<128x128xf32>, vector<32x128xf32> -> vector<32x128xf32>
    %c0_18 = arith.constant 0 : index
    %c0_19 = arith.constant 0 : index
    %32 = vector.load %arg6[%c0_18, %c0_19] : memref<1x128xf32, #tpu.memory_space<vmem>>, vector<1x128xf32>
    %33 = vector.broadcast %32 : vector<1x128xf32> to vector<32x128xf32>
    %34 = arith.addf %31, %33 : vector<32x128xf32>
    %35 = vector.extract_strided_slice %34 {offsets = [0, 0], sizes = [8, 128], strides = [1, 1]} : vector<32x128xf32> to vector<8x128xf32>
    %36 = vector.extract_strided_slice %34 {offsets = [8, 0], sizes = [8, 128], strides = [1, 1]} : vector<32x128xf32> to vector<8x128xf32>
    %37 = vector.extract_strided_slice %34 {offsets = [16, 0], sizes = [8, 128], strides = [1, 1]} : vector<32x128xf32> to vector<8x128xf32>
    %38 = arith.addf %36, %37 : vector<8x128xf32>
    %39 = vector.extract_strided_slice %34 {offsets = [24, 0], sizes = [8, 128], strides = [1, 1]} : vector<32x128xf32> to vector<8x128xf32>
    %40 = arith.addf %38, %39 : vector<8x128xf32>
    %cst_20 = arith.constant 0.333333343 : f32
    %41 = vector.broadcast %cst_20 : f32 to vector<8x128xf32>
    %42 = arith.mulf %40, %41 : vector<8x128xf32>
    %43 = arith.addf %35, %42 : vector<8x128xf32>
    %c0_21 = arith.constant 0 : index
    %c0_22 = arith.constant 0 : index
    %44 = vector.load %arg7[%c0_21, %c0_22] : memref<8x128xf32, #tpu.memory_space<vmem>>, vector<8x128xf32>
    tpu.vector_store %arg7[%c0_21, %c0_22], %43 {strides = array<i32>} : memref<8x128xf32, #tpu.memory_space<vmem>>, vector<8x128xf32>,
    return
  }
}

</mosaic_0001>

<bundles_post_ra>
// kernel: information_node_forward_stacked.1
= control target key start
LH: loop header
LB: loop body
LE: loop exit
PB: predicated region body
PF: predicated region fallthrough
CT: control target
= control target key end

     0   :  { %vm31_vm0 = vcmask 261120   ;;  %s676_s0 = inlined_call_operand.vmem [shape: f32[32,32], index: 0, kind: input, shape index: {}]   ;;  %s677_s1 = inlined_call_operand.vmem [shape: f32[1,32], index: 1, kind: input, shape index: {}]   ;;  %s678_s2 = inlined_call_operand.vmem [shape: f32[1,32], index: 2, kind: input, shape index: {}]   ;;  %s679_s3 = inlined_call_operand.vmem [shape: f32[32,128], index: 3, kind: input, shape index: {}]   ;;  %s680_s4 = inlined_call_operand.vmem [shape: f32[1,128], index: 4, kind: input, shape index: {}]   ;;  %s681_s5 = inlined_call_operand.vmem [shape: f32[128,128], index: 5, kind: input, shape index: {}]   ;;  %s682_s6 = inlined_call_operand.vmem [shape: f32[1,128], index: 6, kind: input, shape index: {}]   ;;  %s683_s7 = inlined_call_operand.hbm [shape: f32[8,128], index: 7, kind: output, shape index: {}]  }
   0x1   :  { %v27_v0 = vld [vmem:[%s676_s0] sm:$0xff]  ;;  %v29_v1 = vld [vmem:[%s676_s0 + $0x10] sm:$0xff]  ;;  %v28_v2 = vld [vmem:[%s676_s0 + $0x8] sm:$0xff] }
   0x2   :  { %v32_v3 = vsel %vm31_vm0, %v27_v0, 0.0  ;;  %v38_v4 = vsel %vm31_vm0, %v29_v1, 0.0  ;;  %v30_v5 = vld [vmem:[%s676_s0 + $0x18] sm:$0xff] }
   0x3   :  { %12 = vsyncpa [#allocation3], 0  ;;  %33 = vadd.xlane.f32.xlu0 %v32_v3  ;;  %39 = vadd.xlane.f32.xlu1 %v38_v4  ;;  %v35_v6 = vsel %vm31_vm0, %v28_v2, 0.0  ;;  %v41_v7 = vsel %vm31_vm0, %v30_v5, 0.0  ;;  %v107_v28 = vld [vmem:[%s679_s3] sm:$0xff]  ;;  %v108_v29 = vld [vmem:[%s679_s3 + $0x8] sm:$0xff] }
   0x4   :  { %v109_v30 = vld [vmem:[%s679_s3 + $0x10] sm:$0xff]  ;;  %v434_v31 = vpack.c.bf16 %v108_v29, %v107_v28  ;;  %v110_v32 = vld [vmem:[%s679_s3 + $0x18] sm:$0xff]  ;;  %v219_v34 = vld [vmem:[%s681_s5] sm:$0xff]  ;;  %s507_s26 = smov [#allocation2]  }
   0x5   :  { %v438_v33 = vpack.c.bf16 %v110_v32, %v109_v30  ;;  %v220_v35 = vld [vmem:[%s681_s5 + $0x8] sm:$0xff]  ;;  %v221_v36 = vld [vmem:[%s681_s5 + $0x10] sm:$0xff]  ;;  %v222_v38 = vld [vmem:[%s681_s5 + $0x18] sm:$0xff]  ;;  %s338_s27 = sshll.u32 %s507_s26, 4  ;;  %s339_s27 = int_to_ptr.vmem [resolvable:$true] %s338_s27 }
   0x6   :  { %435 = vmatprep.subr.bf16.mxu0 %v434_v31  ;;  %v442_v37 = vpack.c.bf16 %v220_v35, %v219_v34  ;;  %v446_v39 = vpack.c.bf16 %v222_v38, %v221_v36  ;;  %v223_v40 = vld [vmem:[%s681_s5 + $0x20] sm:$0xff]  ;;  %v224_v41 = vld [vmem:[%s681_s5 + $0x28] sm:$0xff]  ;;  %v225_v43 = vld [vmem:[%s681_s5 + $0x30] sm:$0xff]  ;;  %s483_s28 = scalar_lea.vmem %s339_s27, 128  ;;  %p488_p1 = scmp.lt.s32.totalorder %s339_s27, %s339_s27 }
   0x7   :  { %36 = vadd.xlane.f32.xlu0 %v35_v6  ;;  %42 = vadd.xlane.f32.xlu1 %v41_v7  ;;  %v450_v42 = vpack.c.bf16 %v224_v41, %v223_v40  ;;  %v226_v44 = vld [vmem:[%s681_s5 + $0x38] sm:$0xff]  ;;  %v227_v46 = vld [vmem:[%s681_s5 + $0x40] sm:$0xff]  ;;  %v228_v47 = vld [vmem:[%s681_s5 + $0x48] sm:$0xff]  ;;  %p484_p0 = scmp.ne.s32.totalorder %s339_s27, %s483_s28  ;;  %p489_p2 = scmp.lt.s32.totalorder %s483_s28, %s483_s28 }
   0x8   :  { %437 = vmatpush3.bf16.msra.mxu0 %v434_v31  ;;  %443 = vmatprep.subr.bf16.mxu1 %v442_v37  ;;  %v454_v45 = vpack.c.bf16 %v226_v44, %v225_v43  ;;  %v458_v48 = vpack.c.bf16 %v228_v47, %v227_v46  ;;  %v229_v49 = vld [vmem:[%s681_s5 + $0x50] sm:$0xff]  ;;  %v230_v50 = vld [vmem:[%s681_s5 + $0x58] sm:$0xff]  ;;  %v231_v52 = vld [vmem:[%s681_s5 + $0x60] sm:$0xff] }
   0x9   :  { %439 = vmatprep.subr.bf16.mxu0 %v438_v33  ;;  %445 = vmatpush3.bf16.msra.mxu1 %v442_v37  ;;  %v462_v51 = vpack.c.bf16 %v230_v50, %v229_v49  ;;  %v232_v53 = vld [vmem:[%s681_s5 + $0x68] sm:$0xff]  ;;  %v346_v4 = vld [vmem:[%s677_s1] ss:$0 sm:$0xff]  ;;  %p490_p3 = por %p489_p2, %p488_p1 }
   0xa   :  { %447 = vmatprep.subr.bf16.mxu1 %v446_v39  ;;  %v466_v54 = vpack.c.bf16 %v232_v53, %v231_v52  ;;  %v347_v6 = vld [vmem:[%s678_s2] ss:$0 sm:$0xff] }
   0xb   :  { %p491_p4 = pnand %p490_p3, %p484_p0 }
   0xc   :  { %441 = vmatpush3.bf16.msra.mxu0 %v438_v33 }
   0xd   :  { %449 = vmatpush3.bf16.msra.mxu1 %v446_v39  ;;  %v353_v39 = vld [vmem:[%s682_s6] ss:$0 sm:$0xff] }
   0xe   :  { %451 = vmatprep.subr.bf16.mxu1 %v450_v42 }
  0x11   :  { %453 = vmatpush3.bf16.msra.mxu1 %v450_v42 }
  0x12   :  { %455 = vmatprep.subr.bf16.mxu1 %v454_v45 }
  0x15   :  { %457 = vmatpush3.bf16.msra.mxu1 %v454_v45 }
  0x16   :  { %459 = vmatprep.subr.bf16.mxu1 %v458_v48 }
  0x19   :  { %461 = vmatpush3.bf16.msra.mxu1 %v458_v48 }
  0x1a   :  { %463 = vmatprep.subr.bf16.mxu1 %v462_v51 }
  0x1d   :  { %465 = vmatpush3.bf16.msra.mxu1 %v462_v51 }
  0x1e   :  { %467 = vmatprep.subr.bf16.mxu1 %v466_v54 }
  0x21   :  { %469 = vmatpush3.bf16.msra.mxu1 %v466_v54 }
  0x90   :  { %v34_v8 = vpop.xlane.xlu0 %33  ;;  %v40_v9 = vpop.xlane.xlu1 %39 }
  0x91   :  { %v45_v10 = vmul.f32 0.03125, %v34_v8  ;;  %v47_v11 = vmul.f32 0.03125, %v40_v9 }
  0x93   :  { %v564_v12 = vsub.f32 %v27_v0, %v45_v10  ;;  %v566_v13 = vsub.f32 %v29_v1, %v47_v11 }
  0x94   :  { %v37_v14 = vpop.xlane.xlu0 %36  ;;  %v43_v15 = vpop.xlane.xlu1 %42 }
  0x95   :  { %v46_v16 = vmul.f32 0.03125, %v37_v14  ;;  %v48_v17 = vmul.f32 0.03125, %v43_v15  ;;  %v53_v18 = vmul.f32 %v564_v12, %v564_v12  ;;  %v55_v19 = vmul.f32 %v566_v13, %v566_v13 }
  0x97   :  { %v572_v20 = vsub.f32 %v28_v2, %v46_v16  ;;  %v574_v21 = vsub.f32 %v30_v5, %v48_v17  ;;  %v57_v22 = vsel %vm31_vm0, %v53_v18, 0.0  ;;  %v63_v23 = vsel %vm31_vm0, %v55_v19, 0.0 }
  0x98   :  { %58 = vadd.xlane.f32.xlu0 %v57_v22 }
  0x99   :  { %v54_v24 = vmul.f32 %v572_v20, %v572_v20  ;;  %v56_v25 = vmul.f32 %v574_v21, %v574_v21 }
  0x9b   :  { %v60_v26 = vsel %vm31_vm0, %v54_v24, 0.0  ;;  %v66_v27 = vsel %vm31_vm0, %v56_v25, 0.0 }
  0x9c   :  { %64 = vadd.xlane.f32.xlu0 %v63_v23  ;;  %61 = vadd.xlane.f32.xlu1 %v60_v26 }
  0xa0   :  { %67 = vadd.xlane.f32.xlu1 %v66_v27 }
 0x125   :  { %v59_v55 = vpop.xlane.xlu0 %58 }
 0x126   :  { %v69_v56 = vmul.f32 0.03125, %v59_v55 }
 0x128   :  { %v73_v57 = vadd.f32 1e-05, %v69_v56 }
 0x129   :  { %v62_v58 = vpop.xlane.xlu1 %61  ;;  %v65_v59 = vpop.xlane.xlu0 %64 }
 0x12a   :  { %475 = vrsqrt.f32 %v73_v57  ;;  %v70_v60 = vmul.f32 0.03125, %v62_v58  ;;  %v71_v61 = vmul.f32 0.03125, %v65_v59 }
 0x12c   :  { %v74_v62 = vadd.f32 1e-05, %v70_v60  ;;  %v75_v63 = vadd.f32 1e-05, %v71_v61 }
 0x12d   :  { %v68_v0 = vpop.xlane.xlu1 %67 }
 0x12e   :  { %477 = vrsqrt.f32 %v74_v62  ;;  %v72_v1 = vmul.f32 0.03125, %v68_v0 }
 0x12f   :  { %479 = vrsqrt.f32 %v75_v63 }
 0x130   :  { %v76_v2 = vadd.f32 1e-05, %v72_v1 }
 0x132   :  { %481 = vrsqrt.f32 %v76_v2 }
 0x134   :  { %v476_v3 = vpop.eup %475 }
 0x135   :  { %v81_v5 = vmul.f32 %v476_v3, %v564_v12 }
 0x137   :  { %v92_v7 = vmul.f32 %v346_v4, %v81_v5 }
 0x138   :  { %v478_v8 = vpop.eup %477 }
 0x139   :  { %v480_v9 = vpop.eup %479  ;;  %v103_v10 = vadd.f32 %v347_v6, %v92_v7  ;;  %v82_v11 = vmul.f32 %v478_v8, %v572_v20  ;;  %v234_v20 = vld [vmem:[%s681_s5 + $0x78] sm:$0xff] }
 0x13a   :  { %v83_v14 = vmul.f32 %v480_v9, %v566_v13  ;;  %v233_v13 = vld [vmem:[%s681_s5 + $0x70] sm:$0xff] }
 0x13b   :  { %390 = vmatprep.mubr.msk.f32.mxu0 %vm31_vm0, %v103_v10  ;;  %v93_v15 = vmul.f32 %v346_v4, %v82_v11  ;;  %v470_v24 = vpack.c.bf16 %v234_v20, %v233_v13 }
 0x13c   :  { %v482_v16 = vpop.eup %481  ;;  %v94_v17 = vmul.f32 %v346_v4, %v83_v14 }
 0x13d   :  { %v104_v18 = vadd.f32 %v347_v6, %v93_v15  ;;  %v84_v12 = vmul.f32 %v482_v16, %v574_v21  ;;  %471 = vmatprep.subr.bf16.mxu1 %v470_v24  ;;  %v348_v21 = vld [vmem:[%s680_s4] ss:$0 sm:$0xff] }
 0x13e   :  { %v105_v19 = vadd.f32 %v347_v6, %v94_v17  ;;  %473 = vmatpush3.bf16.msra.mxu1 %v470_v24 }
 0x13f   :  { %391 = vmatmul.mubr.msk.f32.vlgmr.msra.gmra.mrb[0].mxu0 %vm31_vm0, %v104_v18  ;;  %v95_v22 = vmul.f32 %v346_v4, %v84_v12 }
 0x140   :  { %393 = vmatprep.mubr.msk.f32.mxu0 %vm31_vm0, %v105_v19 }
 0x141   :  { %v106_v23 = vadd.f32 %v347_v6, %v95_v22 }
 0x143   :  { %394 = vmatmul.mubr.msk.f32.gmra.mrb[2].mxu0 %vm31_vm0, %v106_v23 }
 0x212   :  { %v392_v25 = vpop.f32.mrb[0].mxu0 }
 0x213   :  { %v202_v26 = vadd.f32 %v392_v25, %v348_v21  ;;  %v196_v27 = vpop.f32.mrb[1].mxu0 }
 0x214   :  { %v197_v28 = vadd.f32 %v348_v21, %v196_v27 }
 0x215   :  { %v216_v31 = vmax.f32 %v202_v26, 0.0 }
 0x216   :  { %v395_v29 = vpop.f32.mrb[2].mxu0  ;;  %v215_v30 = vmax.f32 %v197_v28, 0.0 }
 0x217   :  { %v212_v32 = vadd.f32 %v395_v29, %v348_v21  ;;  %v206_v33 = vpop.f32.mrb[3].mxu0 }
 0x218   :  { %v207_v34 = vadd.f32 %v348_v21, %v206_v33  ;;  %428 = vmatprep.mubr.f32.mxu1 %v215_v30 }
 0x219   :  { %429 = vmatmul.mubr.f32.vlgmr.msra.gmra.mrb[0].mxu1 %v216_v31  ;;  %v218_v36 = vmax.f32 %v212_v32, 0.0 }
 0x21a   :  { %v217_v35 = vmax.f32 %v207_v34, 0.0 }
 0x21c   :  { %431 = vmatprep.mubr.f32.mxu1 %v217_v35 }
 0x21d   :  { %432 = vmatmul.mubr.f32.gmra.mrb[2].mxu1 %v218_v36 }
 0x2ec   :  { %v430_v37 = vpop.f32.mrb[0].mxu1 }
 0x2ed   :  { %v308_v38 = vpop.f32.mrb[1].mxu1  ;;  %v314_v42 = vadd.f32 %v430_v37, %v353_v39 }
 0x2ee   :  { %v309_v47 = vadd.f32 %v353_v39, %v308_v38 }
 0x2f0   :  { %v433_v40 = vpop.f32.mrb[2].mxu1 }
 0x2f1   :  { %v318_v41 = vpop.f32.mrb[3].mxu1  ;;  %v324_v44 = vadd.f32 %v433_v40, %v353_v39 }
 0x2f2   :  { %v319_v43 = vadd.f32 %v353_v39, %v318_v41 }
 0x2f4   :  { %v327_v45 = vadd.f32 %v319_v43, %v314_v42 }
 0x2f6   :  { %v328_v46 = vadd.f32 %v327_v45, %v324_v44 }
 0x2f8   :  { %v329_v48 = vmul.f32 0.33333334, %v328_v46 }
 0x2fa   :  { %v330_v49 = vadd.f32 %v329_v48, %v309_v47 }
 0x2fc   :  { %331 = vst [vmem:[#allocation2] sm:$0xff] %v330_v49 }
 0x2fd   :  { %494 = shalt.err (!%p491_p4)
}
 0x2fe   :  { %s495_s30 = scalar_lea.hbm %s683_s7, 128 }
 0x2ff   :  { %p496_p5 = scmp.ne.s32.totalorder %s683_s7, %s495_s30  ;;  %p499_p6 = scmp.lt.u32.totalorder %s495_s30, %s683_s7 }
 0x301   :  { %p501_p7 = pnand %p499_p6, %p496_p5 }
 0x303   :  { %504 = shalt.err (!%p501_p7)
}
 0x304   :  { %341 = dma.vmem_to_hbm [thread:$0]  %s339_s27, 128, %s683_s7, [#allocation3]  }
 0x305   :  { %505 = dma.done.wait [#allocation3], 128  }
 0x306   :  { %506 = vsyncadd [#allocation3], 4294967168 }
 0x307   :  { %345 = vsyncpa [#allocation3], 1 }

</bundles_post_ra>
